<compile_context>
chip_gen: v5e
topology: v5e:2x2
jax: 0.10.0
libtpu: 0.0.40
codegen_flags: <defaults>
</compile_context>

<pallas_src>
import math
import jax
import jax.numpy as jnp
from jax.experimental import pallas as pl
from jax.experimental.pallas import tpu as pltpu

# Model hyper-parameters (small, consistent with the module's __init__).
D_MODEL = 32
N_HEAD = 4
HEAD_DIM = D_MODEL // N_HEAD
D_FF = 4 * D_MODEL
EPS = 1e-5  # torch LayerNorm default eps


def _layernorm(x, w, b):
    # Matches F.layer_norm: biased variance over the last dim (f32 math).
    mu = jnp.mean(x, axis=-1, keepdims=True)
    var = jnp.mean((x - mu) ** 2, axis=-1, keepdims=True)
    return (x - mu) * jax.lax.rsqrt(var + EPS) * w + b


def residual_block_kernel(
    x_ref,                                # (TN, L, D) block of sequences (f32)
    ln1_w_ref, ln1_b_ref,                 # (1, D) f32
    wqkv_ref, bqkv_ref,                   # (D, 3D) bf16 pre-T, q-scaled; (1, 3D) f32
    wo_ref, bo_ref,                       # (D, D) bf16 pre-T (in,out); (1, D) f32
    ln2_w_ref, ln2_b_ref,                 # (1, D) f32
    wfc_ref, bfc_ref,                     # (D, 4D) bf16 pre-T; (1, 4D) f32
    wproj_ref, bproj_ref,                 # (4D, D) bf16 pre-T; (1, D) f32
    o_ref,                                # (TN, L, D) f32
):
    tn, L, D = x_ref.shape                # static block shape
    rows = tn * L
    x = x_ref[...].reshape(rows, D)       # leading-dim collapse only (free)

    # ---------------- attention branch ----------------
    xn = _layernorm(x, ln1_w_ref[...], ln1_b_ref[...])

    # Fused QKV projection: one wide bf16 MXU matmul, f32 accumulation.
    # (1/sqrt(HEAD_DIM) is already folded into the Q rows of wqkv / bqkv.)
    qkv = jnp.dot(xn.astype(jnp.bfloat16), wqkv_ref[...],
                  preferred_element_type=jnp.float32) + bqkv_ref[...]  # (rows, 3D) f32
    q = qkv[:, 0 * D:1 * D].reshape(tn, L, D)
    k = qkv[:, 1 * D:2 * D].reshape(tn, L, D)
    v = qkv[:, 2 * D:3 * D].reshape(tn, L, D)

    def stack_heads(t):
        # (tn, L, D) -> (H*tn, L, hd): heads become part of the batch axis via
        # cheap leading-dim concatenation (no sublane transpose needed).
        return jnp.concatenate(
            [t[:, :, h * HEAD_DIM:(h + 1) * HEAD_DIM] for h in range(N_HEAD)],
            axis=0)

    qh = stack_heads(q)                   # (H*tn, L, hd)
    kh = stack_heads(k)
    vh = stack_heads(v)

    # One batched scores einsum + ONE softmax over all heads.
    s = jnp.einsum("nld,nmd->nlm", qh, kh,
                   preferred_element_type=jnp.float32)          # (H*tn, L, L)
    s = s - jnp.max(s, axis=-1, keepdims=True)                  # stable softmax
    p = jnp.exp(s)
    p = p / jnp.sum(p, axis=-1, keepdims=True)                  # exact divide
    oh = jnp.einsum("nlm,nmd->nld", p, vh,
                    preferred_element_type=jnp.float32)         # (H*tn, L, hd)

    # Re-assemble heads on the lane axis, then a single K=32 out-projection.
    attn = jnp.concatenate(
        [oh[h * tn:(h + 1) * tn] for h in range(N_HEAD)], axis=-1)  # (tn, L, D)
    attn = attn.reshape(rows, D)
    attn = jnp.dot(attn.astype(jnp.bfloat16), wo_ref[...],
                   preferred_element_type=jnp.float32) + bo_ref[...]

    x1 = x + attn                          # first residual (f32)

    # ---------------- MLP branch ----------------
    xn2 = _layernorm(x1, ln2_w_ref[...], ln2_b_ref[...])
    h1 = jnp.dot(xn2.astype(jnp.bfloat16), wfc_ref[...],
                 preferred_element_type=jnp.float32) + bfc_ref[...]   # (rows, 4D)
    h1 = h1 * jax.nn.sigmoid(1.702 * h1)                              # QuickGELU (f32)
    h2 = jnp.dot(h1.astype(jnp.bfloat16), wproj_ref[...],
                 preferred_element_type=jnp.float32) + bproj_ref[...] # (rows, D)

    o_ref[...] = (x1 + h2).reshape(tn, L, D)   # second residual


def residual_attention_block(x_lnd, params, tile_n=512):
    """x_lnd: (L, N, D) fp32, like the torch module. Returns (L, N, D).

    tile_n: sequences per grid step. 512 keeps per-block VMEM ~10 MiB (safe on
    every generation incl. v7x's 64 MiB); on v6e it can be raised to 1024-2048
    together with the explicit vmem_limit below for long-N workloads.
    """
    L, N, D = x_lnd.shape
    assert D == D_MODEL

    # ---- one-time (XLA-side) weight prep: transpose / fuse / fold / bf16 ----
    scale = 1.0 / math.sqrt(HEAD_DIM)
    wqkv_t = jnp.concatenate(
        [params["wq"] * scale, params["wk"], params["wv"]],
        axis=0).T.astype(jnp.bfloat16)                                  # (D, 3D)
    bqkv = jnp.concatenate(
        [params["bq"] * scale, params["bk"], params["bv"]], axis=1)     # (1, 3D) f32
    wo_t = params["wo"].T.astype(jnp.bfloat16)        # (D, D)  (in, out)
    wfc_t = params["wfc"].T.astype(jnp.bfloat16)      # (D, 4D)
    wproj_t = params["wproj"].T.astype(jnp.bfloat16)  # (4D, D)

    plist = [
        params["ln1_w"], params["ln1_b"],
        wqkv_t, bqkv,
        wo_t, params["bo"],
        params["ln2_w"], params["ln2_b"],
        wfc_t, params["bfc"],
        wproj_t, params["bproj"],
    ]

    x = jnp.transpose(x_lnd, (1, 0, 2))    # (N, L, D) kernel layout
    tile_n = max(1, min(tile_n, N))
    if N >= 2:
        # Keep >= 2 grid steps so the "parallel" axis shards across both
        # TensorCores on v7x (free on single-TC chips).
        tile_n = max(1, min(tile_n, (N + 1) // 2))
    n_blocks = pl.cdiv(N, tile_n)
    n_pad = n_blocks * tile_n
    if n_pad != N:                         # pad batch to a tile multiple
        x = jnp.pad(x, ((0, n_pad - N), (0, 0), (0, 0)))

    def full_spec(p):
        nd = p.ndim
        return pl.BlockSpec(p.shape, lambda n, _nd=nd: (0,) * _nd)

    out = pl.pallas_call(
        residual_block_kernel,
        out_shape=jax.ShapeDtypeStruct((n_pad, L, D), jnp.float32),
        grid_spec=pltpu.PrefetchScalarGridSpec(
            num_scalar_prefetch=0,
            grid=(n_blocks,),
            in_specs=[pl.BlockSpec((tile_n, L, D), lambda n: (n, 0, 0))]
                     + [full_spec(p) for p in plist],
            out_specs=pl.BlockSpec((tile_n, L, D), lambda n: (n, 0, 0)),
        ),
        compiler_params=pltpu.CompilerParams(
            dimension_semantics=("parallel",),
            vmem_limit_bytes=64 * 1024 * 1024),
    )(x, *plist)

    out = out[:N]
    return jnp.transpose(out, (1, 0, 2))   # back to (L, N, D)


# ---------------- pure-JAX reference (for correctness check) ----------------
def reference_block(x_lnd, p):
    x = jnp.transpose(x_lnd, (1, 0, 2))    # (N, L, D)

    def ln(y, w, b):
        mu = y.mean(-1, keepdims=True)
        var = ((y - mu) ** 2).mean(-1, keepdims=True)
        return (y - mu) / jnp.sqrt(var + EPS) * w + b

    xn = ln(x, p["ln1_w"][0], p["ln1_b"][0])
    q = xn @ p["wq"].T + p["bq"][0]
    k = xn @ p["wk"].T + p["bk"][0]
    v = xn @ p["wv"].T + p["bv"][0]
    N, L, _ = x.shape
    q = q.reshape(N, L, N_HEAD, HEAD_DIM) / math.sqrt(HEAD_DIM)
    k = k.reshape(N, L, N_HEAD, HEAD_DIM)
    v = v.reshape(N, L, N_HEAD, HEAD_DIM)
    s = jnp.einsum("nlhd,nmhd->nhlm", q, k)
    a = jax.nn.softmax(s, axis=-1)
    o = jnp.einsum("nhlm,nmhd->nlhd", a, v).reshape(N, L, D_MODEL)
    o = o @ p["wo"].T + p["bo"][0]
    x1 = x + o

    xn2 = ln(x1, p["ln2_w"][0], p["ln2_b"][0])
    h1 = xn2 @ p["wfc"].T + p["bfc"][0]
    h1 = h1 * jax.nn.sigmoid(1.702 * h1)
    h2 = h1 @ p["wproj"].T + p["bproj"][0]
    return jnp.transpose(x1 + h2, (1, 0, 2))


def make_params(key):
    ks = jax.random.split(key, 12)
    std = 0.02
    p = {
        # LayerNorm params (stored as (1, D) for clean 2-D VMEM layout)
        "ln1_w": 1.0 + 0.1 * jax.random.normal(ks[0], (1, D_MODEL), jnp.float32),
        "ln1_b": 0.1 * jax.random.normal(ks[1], (1, D_MODEL), jnp.float32),
        "ln2_w": 1.0 + 0.1 * jax.random.normal(ks[2], (1, D_MODEL), jnp.float32),
        "ln2_b": 0.1 * jax.random.normal(ks[3], (1, D_MODEL), jnp.float32),
        # MultiheadAttention in_proj (split into q/k/v rows) + out_proj
        "wq": std * jax.random.normal(ks[4], (D_MODEL, D_MODEL), jnp.float32),
        "wk": std * jax.random.normal(ks[5], (D_MODEL, D_MODEL), jnp.float32),
        "wv": std * jax.random.normal(ks[6], (D_MODEL, D_MODEL), jnp.float32),
        "bq": std * jax.random.normal(ks[7], (1, D_MODEL), jnp.float32),
        "bk": std * jax.random.normal(ks[7], (1, D_MODEL), jnp.float32) * 0.5,
        "bv": std * jax.random.normal(ks[7], (1, D_MODEL), jnp.float32) * 0.25,
        "wo": std * jax.random.normal(ks[8], (D_MODEL, D_MODEL), jnp.float32),
        "bo": std * jax.random.normal(ks[8], (1, D_MODEL), jnp.float32) * 0.5,
        # MLP: c_fc (D -> 4D), c_proj (4D -> D)
        "wfc": std * jax.random.normal(ks[9], (D_FF, D_MODEL), jnp.float32),
        "bfc": std * jax.random.normal(ks[10], (1, D_FF), jnp.float32),
        "wproj": std * jax.random.normal(ks[11], (D_MODEL, D_FF), jnp.float32),
        "bproj": std * jax.random.normal(ks[11], (1, D_MODEL), jnp.float32) * 0.5,
    }
    return p


if __name__ == "__main__":
    key = jax.random.PRNGKey(0)
    k_x, k_p = jax.random.split(key)

    L, N = 8, 2                                         # seq=8, batch=2
    x = jax.random.normal(k_x, (L, N, D_MODEL), jnp.float32)  # (L, N, D) like torch
    params = make_params(k_p)

    out = residual_attention_block(x, params)
    out = jax.block_until_ready(out)

    ref = jax.block_until_ready(reference_block(x, params))
    assert out.shape == (L, N, D_MODEL)
    # Tolerance covers the bf16 MXU operands (f32 accumulation); observed
    # error at these scales is ~1e-3.
    assert jnp.allclose(out, ref, rtol=1e-2, atol=1e-2), (
        f"max abs err {float(jnp.max(jnp.abs(out - ref)))}")

    print("KERNEL_OK")
</pallas_src>

<mosaic_0001>
module attributes {stable_mosaic.version = 11 : i64} {
  func.func @residual_block_kernel(%arg0: i32, %arg1: memref<1x8x32xf32, #tpu.memory_space<vmem>>, %arg2: memref<1x32xf32, #tpu.memory_space<vmem>>, %arg3: memref<1x32xf32, #tpu.memory_space<vmem>>, %arg4: memref<32x96xbf16, #tpu.memory_space<vmem>>, %arg5: memref<1x96xf32, #tpu.memory_space<vmem>>, %arg6: memref<32x32xbf16, #tpu.memory_space<vmem>>, %arg7: memref<1x32xf32, #tpu.memory_space<vmem>>, %arg8: memref<1x32xf32, #tpu.memory_space<vmem>>, %arg9: memref<1x32xf32, #tpu.memory_space<vmem>>, %arg10: memref<32x128xbf16, #tpu.memory_space<vmem>>, %arg11: memref<1x128xf32, #tpu.memory_space<vmem>>, %arg12: memref<128x32xbf16, #tpu.memory_space<vmem>>, %arg13: memref<1x32xf32, #tpu.memory_space<vmem>>, %arg14: memref<1x8x32xf32, #tpu.memory_space<vmem>>) attributes {dimension_semantics = [#tpu.dimension_semantics<parallel>], iteration_bounds = array<i64: 2>, scalar_prefetch = 0 : i64, scratch_operands = 0 : i64, tpu.core_type = #tpu.core_type<tc>, window_params = [{transform_indices = @transform_0, window_bounds = array<i64: 1, 8, 32>}, {pipeline_mode = #tpu.pipeline_mode<synchronous>, transform_indices = @transform_1, window_bounds = array<i64: 1, 32>}, {pipeline_mode = #tpu.pipeline_mode<synchronous>, transform_indices = @transform_2, window_bounds = array<i64: 1, 32>}, {pipeline_mode = #tpu.pipeline_mode<synchronous>, transform_indices = @transform_3, window_bounds = array<i64: 32, 96>}, {pipeline_mode = #tpu.pipeline_mode<synchronous>, transform_indices = @transform_4, window_bounds = array<i64: 1, 96>}, {pipeline_mode = #tpu.pipeline_mode<synchronous>, transform_indices = @transform_5, window_bounds = array<i64: 32, 32>}, {pipeline_mode = #tpu.pipeline_mode<synchronous>, transform_indices = @transform_6, window_bounds = array<i64: 1, 32>}, {pipeline_mode = #tpu.pipeline_mode<synchronous>, transform_indices = @transform_7, window_bounds = array<i64: 1, 32>}, {pipeline_mode = #tpu.pipeline_mode<synchronous>, transform_indices = @transform_8, window_bounds = array<i64: 1, 32>}, {pipeline_mode = #tpu.pipeline_mode<synchronous>, transform_indices = @transform_9, window_bounds = array<i64: 32, 128>}, {pipeline_mode = #tpu.pipeline_mode<synchronous>, transform_indices = @transform_10, window_bounds = array<i64: 1, 128>}, {pipeline_mode = #tpu.pipeline_mode<synchronous>, transform_indices = @transform_11, window_bounds = array<i64: 128, 32>}, {pipeline_mode = #tpu.pipeline_mode<synchronous>, transform_indices = @transform_12, window_bounds = array<i64: 1, 32>}, {transform_indices = @transform_13, window_bounds = array<i64: 1, 8, 32>}]} {
    %c0 = arith.constant 0 : index
    %c0_0 = arith.constant 0 : index
    %c0_1 = arith.constant 0 : index
    %0 = vector.load %arg1[%c0, %c0_0, %c0_1] : memref<1x8x32xf32, #tpu.memory_space<vmem>>, vector<1x8x32xf32>
    %1 = vector.shape_cast %0 : vector<1x8x32xf32> to vector<8x32xf32>
    %c0_2 = arith.constant 0 : index
    %c0_3 = arith.constant 0 : index
    %2 = vector.load %arg2[%c0_2, %c0_3] : memref<1x32xf32, #tpu.memory_space<vmem>>, vector<1x32xf32>
    %c0_4 = arith.constant 0 : index
    %c0_5 = arith.constant 0 : index
    %3 = vector.load %arg3[%c0_4, %c0_5] : memref<1x32xf32, #tpu.memory_space<vmem>>, vector<1x32xf32>
    %cst = arith.constant dense<0.000000e+00> : vector<8xf32>
    %4 = vector.multi_reduction <add>, %1, %cst [1] : vector<8x32xf32> to vector<8xf32>
    %5 = vector.shape_cast %4 : vector<8xf32> to vector<8x1xf32>
    %cst_6 = arith.constant 3.200000e+01 : f32
    %6 = vector.broadcast %cst_6 : f32 to vector<8x1xf32>
    %7 = arith.divf %5, %6 : vector<8x1xf32>
    %8 = vector.broadcast %7 : vector<8x1xf32> to vector<8x32xf32>
    %9 = arith.subf %1, %8 : vector<8x32xf32>
    %10 = arith.mulf %9, %9 : vector<8x32xf32>
    %cst_7 = arith.constant dense<0.000000e+00> : vector<8xf32>
    %11 = vector.multi_reduction <add>, %10, %cst_7 [1] : vector<8x32xf32> to vector<8xf32>
    %12 = vector.shape_cast %11 : vector<8xf32> to vector<8x1xf32>
    %cst_8 = arith.constant 3.200000e+01 : f32
    %13 = vector.broadcast %cst_8 : f32 to vector<8x1xf32>
    %14 = arith.divf %12, %13 : vector<8x1xf32>
    %15 = vector.broadcast %7 : vector<8x1xf32> to vector<8x32xf32>
    %16 = arith.subf %1, %15 : vector<8x32xf32>
    %cst_9 = arith.constant 9.99999974E-6 : f32
    %17 = vector.broadcast %cst_9 : f32 to vector<8x1xf32>
    %18 = arith.addf %14, %17 : vector<8x1xf32>
    %19 = math.rsqrt %18 : vector<8x1xf32>
    %20 = vector.broadcast %19 : vector<8x1xf32> to vector<8x32xf32>
    %21 = arith.mulf %16, %20 : vector<8x32xf32>
    %22 = vector.broadcast %2 : vector<1x32xf32> to vector<8x32xf32>
    %23 = arith.mulf %21, %22 : vector<8x32xf32>
    %24 = vector.broadcast %3 : vector<1x32xf32> to vector<8x32xf32>
    %25 = arith.addf %23, %24 : vector<8x32xf32>
    %26 = arith.truncf %25 : vector<8x32xf32> to vector<8x32xbf16>
    %c0_10 = arith.constant 0 : index
    %c0_11 = arith.constant 0 : index
    %27 = vector.load %arg4[%c0_10, %c0_11] : memref<32x96xbf16, #tpu.memory_space<vmem>>, vector<32x96xbf16>
    %cst_12 = arith.constant dense<0.000000e+00> : vector<8x96xf32>
    %28 = tpu.matmul %26, %27, %cst_12 {dimension_numbers = #tpu.dot_dimension_numbers<[1], [0], [0], [1], [0, 0, 1, 1], [], []>} : vector<8x32xbf16>, vector<32x96xbf16>, vector<8x96xf32> -> vector<8x96xf32>
    %c0_13 = arith.constant 0 : index
    %c0_14 = arith.constant 0 : index
    %29 = vector.load %arg5[%c0_13, %c0_14] : memref<1x96xf32, #tpu.memory_space<vmem>>, vector<1x96xf32>
    %30 = vector.broadcast %29 : vector<1x96xf32> to vector<8x96xf32>
    %31 = arith.addf %28, %30 : vector<8x96xf32>
    %32 = vector.extract_strided_slice %31 {offsets = [0, 0], sizes = [8, 32], strides = [1, 1]} : vector<8x96xf32> to vector<8x32xf32>
    %33 = vector.shape_cast %32 : vector<8x32xf32> to vector<1x8x32xf32>
    %34 = vector.extract_strided_slice %31 {offsets = [0, 32], sizes = [8, 32], strides = [1, 1]} : vector<8x96xf32> to vector<8x32xf32>
    %35 = vector.shape_cast %34 : vector<8x32xf32> to vector<1x8x32xf32>
    %36 = vector.extract_strided_slice %31 {offsets = [0, 64], sizes = [8, 32], strides = [1, 1]} : vector<8x96xf32> to vector<8x32xf32>
    %37 = vector.shape_cast %36 : vector<8x32xf32> to vector<1x8x32xf32>
    %38 = vector.extract_strided_slice %33 {offsets = [0, 0, 0], sizes = [1, 8, 8], strides = [1, 1, 1]} : vector<1x8x32xf32> to vector<1x8x8xf32>
    %39 = vector.extract_strided_slice %33 {offsets = [0, 0, 8], sizes = [1, 8, 8], strides = [1, 1, 1]} : vector<1x8x32xf32> to vector<1x8x8xf32>
    %40 = vector.extract_strided_slice %33 {offsets = [0, 0, 16], sizes = [1, 8, 8], strides = [1, 1, 1]} : vector<1x8x32xf32> to vector<1x8x8xf32>
    %41 = vector.extract_strided_slice %33 {offsets = [0, 0, 24], sizes = [1, 8, 8], strides = [1, 1, 1]} : vector<1x8x32xf32> to vector<1x8x8xf32>
    %42 = tpu.concatenate %38, %39, %40, %41 in 0 : vector<1x8x8xf32>, vector<1x8x8xf32>, vector<1x8x8xf32>, vector<1x8x8xf32> -> vector<4x8x8xf32>
    %43 = vector.extract_strided_slice %35 {offsets = [0, 0, 0], sizes = [1, 8, 8], strides = [1, 1, 1]} : vector<1x8x32xf32> to vector<1x8x8xf32>
    %44 = vector.extract_strided_slice %35 {offsets = [0, 0, 8], sizes = [1, 8, 8], strides = [1, 1, 1]} : vector<1x8x32xf32> to vector<1x8x8xf32>
    %45 = vector.extract_strided_slice %35 {offsets = [0, 0, 16], sizes = [1, 8, 8], strides = [1, 1, 1]} : vector<1x8x32xf32> to vector<1x8x8xf32>
    %46 = vector.extract_strided_slice %35 {offsets = [0, 0, 24], sizes = [1, 8, 8], strides = [1, 1, 1]} : vector<1x8x32xf32> to vector<1x8x8xf32>
    %47 = tpu.concatenate %43, %44, %45, %46 in 0 : vector<1x8x8xf32>, vector<1x8x8xf32>, vector<1x8x8xf32>, vector<1x8x8xf32> -> vector<4x8x8xf32>
    %48 = vector.extract_strided_slice %37 {offsets = [0, 0, 0], sizes = [1, 8, 8], strides = [1, 1, 1]} : vector<1x8x32xf32> to vector<1x8x8xf32>
    %49 = vector.extract_strided_slice %37 {offsets = [0, 0, 8], sizes = [1, 8, 8], strides = [1, 1, 1]} : vector<1x8x32xf32> to vector<1x8x8xf32>
    %50 = vector.extract_strided_slice %37 {offsets = [0, 0, 16], sizes = [1, 8, 8], strides = [1, 1, 1]} : vector<1x8x32xf32> to vector<1x8x8xf32>
    %51 = vector.extract_strided_slice %37 {offsets = [0, 0, 24], sizes = [1, 8, 8], strides = [1, 1, 1]} : vector<1x8x32xf32> to vector<1x8x8xf32>
    %52 = tpu.concatenate %48, %49, %50, %51 in 0 : vector<1x8x8xf32>, vector<1x8x8xf32>, vector<1x8x8xf32>, vector<1x8x8xf32> -> vector<4x8x8xf32>
    "tpu.trace_start"() <{level = 10 : i32, message = "nld,nmd->nlm"}> : () -> ()
    %cst_15 = arith.constant dense<0.000000e+00> : vector<4x8x8xf32>
    %53 = tpu.matmul %42, %47, %cst_15 {dimension_numbers = #tpu.dot_dimension_numbers<[2], [2], [1], [1], [0, 0, 0, 1, 1, 1], [0], [0]>} : vector<4x8x8xf32>, vector<4x8x8xf32>, vector<4x8x8xf32> -> vector<4x8x8xf32>
    "tpu.trace_stop"() : () -> ()
    %cst_16 = arith.constant dense<0xFF800000> : vector<4x8xf32>
    %54 = vector.multi_reduction <maximumf>, %53, %cst_16 [2] : vector<4x8x8xf32> to vector<4x8xf32>
    %55 = vector.shape_cast %54 : vector<4x8xf32> to vector<4x8x1xf32>
    %56 = vector.broadcast %55 : vector<4x8x1xf32> to vector<4x8x8xf32>
    %57 = arith.subf %53, %56 : vector<4x8x8xf32>
    %58 = math.exp %57 : vector<4x8x8xf32>
    %cst_17 = arith.constant dense<0.000000e+00> : vector<4x8xf32>
    %59 = vector.multi_reduction <add>, %58, %cst_17 [2] : vector<4x8x8xf32> to vector<4x8xf32>
    %60 = vector.shape_cast %59 : vector<4x8xf32> to vector<4x8x1xf32>
    %61 = vector.broadcast %60 : vector<4x8x1xf32> to vector<4x8x8xf32>
    %62 = arith.divf %58, %61 : vector<4x8x8xf32>
    "tpu.trace_start"() <{level = 10 : i32, message = "nlm,nmd->nld"}> : () -> ()
    %cst_18 = arith.constant dense<0.000000e+00> : vector<4x8x8xf32>
    %63 = tpu.matmul %62, %52, %cst_18 {dimension_numbers = #tpu.dot_dimension_numbers<[2], [1], [1], [2], [0, 0, 0, 1, 1, 2], [0], [0]>} : vector<4x8x8xf32>, vector<4x8x8xf32>, vector<4x8x8xf32> -> vector<4x8x8xf32>
    "tpu.trace_stop"() : () -> ()
    %64 = vector.extract_strided_slice %63 {offsets = [0, 0, 0], sizes = [1, 8, 8], strides = [1, 1, 1]} : vector<4x8x8xf32> to vector<1x8x8xf32>
    %65 = vector.extract_strided_slice %63 {offsets = [1, 0, 0], sizes = [1, 8, 8], strides = [1, 1, 1]} : vector<4x8x8xf32> to vector<1x8x8xf32>
    %66 = vector.extract_strided_slice %63 {offsets = [2, 0, 0], sizes = [1, 8, 8], strides = [1, 1, 1]} : vector<4x8x8xf32> to vector<1x8x8xf32>
    %67 = vector.extract_strided_slice %63 {offsets = [3, 0, 0], sizes = [1, 8, 8], strides = [1, 1, 1]} : vector<4x8x8xf32> to vector<1x8x8xf32>
    %68 = tpu.concatenate %64, %65, %66, %67 in 2 : vector<1x8x8xf32>, vector<1x8x8xf32>, vector<1x8x8xf32>, vector<1x8x8xf32> -> vector<1x8x32xf32>
    %69 = vector.shape_cast %68 : vector<1x8x32xf32> to vector<8x32xf32>
    %70 = arith.truncf %69 : vector<8x32xf32> to vector<8x32xbf16>
    %c0_19 = arith.constant 0 : index
    %c0_20 = arith.constant 0 : index
    %71 = vector.load %arg6[%c0_19, %c0_20] : memref<32x32xbf16, #tpu.memory_space<vmem>>, vector<32x32xbf16>
    %cst_21 = arith.constant dense<0.000000e+00> : vector<8x32xf32>
    %72 = tpu.matmul %70, %71, %cst_21 {dimension_numbers = #tpu.dot_dimension_numbers<[1], [0], [0], [1], [0, 0, 1, 1], [], []>} : vector<8x32xbf16>, vector<32x32xbf16>, vector<8x32xf32> -> vector<8x32xf32>
    %c0_22 = arith.constant 0 : index
    %c0_23 = arith.constant 0 : index
    %73 = vector.load %arg7[%c0_22, %c0_23] : memref<1x32xf32, #tpu.memory_space<vmem>>, vector<1x32xf32>
    %74 = vector.broadcast %73 : vector<1x32xf32> to vector<8x32xf32>
    %75 = arith.addf %72, %74 : vector<8x32xf32>
    %76 = arith.addf %1, %75 : vector<8x32xf32>
    %c0_24 = arith.constant 0 : index
    %c0_25 = arith.constant 0 : index
    %77 = vector.load %arg8[%c0_24, %c0_25] : memref<1x32xf32, #tpu.memory_space<vmem>>, vector<1x32xf32>
    %c0_26 = arith.constant 0 : index
    %c0_27 = arith.constant 0 : index
    %78 = vector.load %arg9[%c0_26, %c0_27] : memref<1x32xf32, #tpu.memory_space<vmem>>, vector<1x32xf32>
    %cst_28 = arith.constant dense<0.000000e+00> : vector<8xf32>
    %79 = vector.multi_reduction <add>, %76, %cst_28 [1] : vector<8x32xf32> to vector<8xf32>
    %80 = vector.shape_cast %79 : vector<8xf32> to vector<8x1xf32>
    %cst_29 = arith.constant 3.200000e+01 : f32
    %81 = vector.broadcast %cst_29 : f32 to vector<8x1xf32>
    %82 = arith.divf %80, %81 : vector<8x1xf32>
    %83 = vector.broadcast %82 : vector<8x1xf32> to vector<8x32xf32>
    %84 = arith.subf %76, %83 : vector<8x32xf32>
    %85 = arith.mulf %84, %84 : vector<8x32xf32>
    %cst_30 = arith.constant dense<0.000000e+00> : vector<8xf32>
    %86 = vector.multi_reduction <add>, %85, %cst_30 [1] : vector<8x32xf32> to vector<8xf32>
    %87 = vector.shape_cast %86 : vector<8xf32> to vector<8x1xf32>
    %cst_31 = arith.constant 3.200000e+01 : f32
    %88 = vector.broadcast %cst_31 : f32 to vector<8x1xf32>
    %89 = arith.divf %87, %88 : vector<8x1xf32>
    %90 = vector.broadcast %82 : vector<8x1xf32> to vector<8x32xf32>
    %91 = arith.subf %76, %90 : vector<8x32xf32>
    %cst_32 = arith.constant 9.99999974E-6 : f32
    %92 = vector.broadcast %cst_32 : f32 to vector<8x1xf32>
    %93 = arith.addf %89, %92 : vector<8x1xf32>
    %94 = math.rsqrt %93 : vector<8x1xf32>
    %95 = vector.broadcast %94 : vector<8x1xf32> to vector<8x32xf32>
    %96 = arith.mulf %91, %95 : vector<8x32xf32>
    %97 = vector.broadcast %77 : vector<1x32xf32> to vector<8x32xf32>
    %98 = arith.mulf %96, %97 : vector<8x32xf32>
    %99 = vector.broadcast %78 : vector<1x32xf32> to vector<8x32xf32>
    %100 = arith.addf %98, %99 : vector<8x32xf32>
    %101 = arith.truncf %100 : vector<8x32xf32> to vector<8x32xbf16>
    %c0_33 = arith.constant 0 : index
    %c0_34 = arith.constant 0 : index
    %102 = vector.load %arg10[%c0_33, %c0_34] : memref<32x128xbf16, #tpu.memory_space<vmem>>, vector<32x128xbf16>
    %cst_35 = arith.constant dense<0.000000e+00> : vector<8x128xf32>
    %103 = tpu.matmul %101, %102, %cst_35 {dimension_numbers = #tpu.dot_dimension_numbers<[1], [0], [0], [1], [0, 0, 1, 1], [], []>} : vector<8x32xbf16>, vector<32x128xbf16>, vector<8x128xf32> -> vector<8x128xf32>
    %c0_36 = arith.constant 0 : index
    %c0_37 = arith.constant 0 : index
    %104 = vector.load %arg11[%c0_36, %c0_37] : memref<1x128xf32, #tpu.memory_space<vmem>>, vector<1x128xf32>
    %105 = vector.broadcast %104 : vector<1x128xf32> to vector<8x128xf32>
    %106 = arith.addf %103, %105 : vector<8x128xf32>
    %cst_38 = arith.constant 1.702000e+00 : f32
    %107 = vector.broadcast %cst_38 : f32 to vector<8x128xf32>
    %108 = arith.mulf %107, %106 : vector<8x128xf32>
    %109 = arith.negf %108 : vector<8x128xf32>
    %110 = math.exp %109 : vector<8x128xf32>
    %cst_39 = arith.constant 1.000000e+00 : f32
    %111 = vector.broadcast %cst_39 : f32 to vector<8x128xf32>
    %112 = arith.addf %111, %110 : vector<8x128xf32>
    %113 = arith.divf %111, %112 : vector<8x128xf32>
    %114 = arith.mulf %106, %113 : vector<8x128xf32>
    %115 = arith.truncf %114 : vector<8x128xf32> to vector<8x128xbf16>
    %c0_40 = arith.constant 0 : index
    %c0_41 = arith.constant 0 : index
    %116 = vector.load %arg12[%c0_40, %c0_41] : memref<128x32xbf16, #tpu.memory_space<vmem>>, vector<128x32xbf16>
    %cst_42 = arith.constant dense<0.000000e+00> : vector<8x32xf32>
    %117 = tpu.matmul %115, %116, %cst_42 {dimension_numbers = #tpu.dot_dimension_numbers<[1], [0], [0], [1], [0, 0, 1, 1], [], []>} : vector<8x128xbf16>, vector<128x32xbf16>, vector<8x32xf32> -> vector<8x32xf32>
    %c0_43 = arith.constant 0 : index
    %c0_44 = arith.constant 0 : index
    %118 = vector.load %arg13[%c0_43, %c0_44] : memref<1x32xf32, #tpu.memory_space<vmem>>, vector<1x32xf32>
    %119 = vector.broadcast %118 : vector<1x32xf32> to vector<8x32xf32>
    %120 = arith.addf %117, %119 : vector<8x32xf32>
    %121 = arith.addf %76, %120 : vector<8x32xf32>
    %122 = vector.shape_cast %121 : vector<8x32xf32> to vector<1x8x32xf32>
    %c0_45 = arith.constant 0 : index
    %c0_46 = arith.constant 0 : index
    %c0_47 = arith.constant 0 : index
    %123 = vector.load %arg14[%c0_45, %c0_46, %c0_47] : memref<1x8x32xf32, #tpu.memory_space<vmem>>, vector<1x8x32xf32>
    tpu.vector_store %arg14[%c0_45, %c0_46, %c0_47], %122 {strides = array<i32>} : memref<1x8x32xf32, #tpu.memory_space<vmem>>, vector<1x8x32xf32>,
    return
  }
  func.func @transform_0(%arg0: i32) -> (i32, i32, i32) {
    %c0_i32 = arith.constant 0 : i32
    %c0_i32_0 = arith.constant 0 : i32
    %c0_i32_1 = arith.constant 0 : i32
    return %arg0, %c0_i32, %c0_i32_0 : i32, i32, i32
  }
  func.func @transform_1(%arg0: i32) -> (i32, i32) {
    %c0_i32 = arith.constant 0 : i32
    %c0_i32_0 = arith.constant 0 : i32
    %c0_i32_1 = arith.constant 0 : i32
    return %c0_i32, %c0_i32_0 : i32, i32
  }
  func.func @transform_2(%arg0: i32) -> (i32, i32) {
    %c0_i32 = arith.constant 0 : i32
    %c0_i32_0 = arith.constant 0 : i32
    %c0_i32_1 = arith.constant 0 : i32
    return %c0_i32, %c0_i32_0 : i32, i32
  }
  func.func @transform_3(%arg0: i32) -> (i32, i32) {
    %c0_i32 = arith.constant 0 : i32
    %c0_i32_0 = arith.constant 0 : i32
    %c0_i32_1 = arith.constant 0 : i32
    return %c0_i32, %c0_i32_0 : i32, i32
  }
  func.func @transform_4(%arg0: i32) -> (i32, i32) {
    %c0_i32 = arith.constant 0 : i32
    %c0_i32_0 = arith.constant 0 : i32
    %c0_i32_1 = arith.constant 0 : i32
    return %c0_i32, %c0_i32_0 : i32, i32
  }
  func.func @transform_5(%arg0: i32) -> (i32, i32) {
    %c0_i32 = arith.constant 0 : i32
    %c0_i32_0 = arith.constant 0 : i32
    %c0_i32_1 = arith.constant 0 : i32
    return %c0_i32, %c0_i32_0 : i32, i32
  }
  func.func @transform_6(%arg0: i32) -> (i32, i32) {
    %c0_i32 = arith.constant 0 : i32
    %c0_i32_0 = arith.constant 0 : i32
    %c0_i32_1 = arith.constant 0 : i32
    return %c0_i32, %c0_i32_0 : i32, i32
  }
  func.func @transform_7(%arg0: i32) -> (i32, i32) {
    %c0_i32 = arith.constant 0 : i32
    %c0_i32_0 = arith.constant 0 : i32
    %c0_i32_1 = arith.constant 0 : i32
    return %c0_i32, %c0_i32_0 : i32, i32
  }
  func.func @transform_8(%arg0: i32) -> (i32, i32) {
    %c0_i32 = arith.constant 0 : i32
    %c0_i32_0 = arith.constant 0 : i32
    %c0_i32_1 = arith.constant 0 : i32
    return %c0_i32, %c0_i32_0 : i32, i32
  }
  func.func @transform_9(%arg0: i32) -> (i32, i32) {
    %c0_i32 = arith.constant 0 : i32
    %c0_i32_0 = arith.constant 0 : i32
    %c0_i32_1 = arith.constant 0 : i32
    return %c0_i32, %c0_i32_0 : i32, i32
  }
  func.func @transform_10(%arg0: i32) -> (i32, i32) {
    %c0_i32 = arith.constant 0 : i32
    %c0_i32_0 = arith.constant 0 : i32
    %c0_i32_1 = arith.constant 0 : i32
    return %c0_i32, %c0_i32_0 : i32, i32
  }
  func.func @transform_11(%arg0: i32) -> (i32, i32) {
    %c0_i32 = arith.constant 0 : i32
    %c0_i32_0 = arith.constant 0 : i32
    %c0_i32_1 = arith.constant 0 : i32
    return %c0_i32, %c0_i32_0 : i32, i32
  }
  func.func @transform_12(%arg0: i32) -> (i32, i32) {
    %c0_i32 = arith.constant 0 : i32
    %c0_i32_0 = arith.constant 0 : i32
    %c0_i32_1 = arith.constant 0 : i32
    return %c0_i32, %c0_i32_0 : i32, i32
  }
  func.func @transform_13(%arg0: i32) -> (i32, i32, i32) {
    %c0_i32 = arith.constant 0 : i32
    %c0_i32_0 = arith.constant 0 : i32
    %c0_i32_1 = arith.constant 0 : i32
    return %arg0, %c0_i32, %c0_i32_0 : i32, i32, i32
  }
}

</mosaic_0001>

<bundles_post_ra>
// kernel: tpu_custom_call.1
= control target key start
LH: loop header
LB: loop body
LE: loop exit
PB: predicated region body
PF: predicated region fallthrough
CT: control target
= control target key end

     0   :  { %s1682_s0 = inlined_call_operand.vmem [shape: f32[2,8,32], index: 0, kind: input, shape index: {}]   ;;  %s1683_s1 = inlined_call_operand.vmem [shape: f32[1,32], index: 1, kind: input, shape index: {}]   ;;  %s1684_s2 = inlined_call_operand.vmem [shape: f32[1,32], index: 2, kind: input, shape index: {}]   ;;  %s1685_s3 = inlined_call_operand.vmem [shape: bf16[32,96], index: 3, kind: input, shape index: {}]   ;;  %s1686_s4 = inlined_call_operand.vmem [shape: f32[1,96], index: 4, kind: input, shape index: {}]   ;;  %s1687_s5 = inlined_call_operand.vmem [shape: bf16[32,32], index: 5, kind: input, shape index: {}]   ;;  %s1688_s6 = inlined_call_operand.vmem [shape: f32[1,32], index: 6, kind: input, shape index: {}]   ;;  %s1689_s7 = inlined_call_operand.vmem [shape: f32[1,32], index: 7, kind: input, shape index: {}]   ;;  %s1690_s8 = inlined_call_operand.vmem [shape: f32[1,32], index: 8, kind: input, shape index: {}]   ;;  %s1691_s9 = inlined_call_operand.vmem [shape: bf16[32,128], index: 9, kind: input, shape index: {}]   ;;  %s1692_s10 = inlined_call_operand.vmem [shape: f32[1,128], index: 10, kind: input, shape index: {}]   ;;  %s1693_s11 = inlined_call_operand.vmem [shape: bf16[128,32], index: 11, kind: input, shape index: {}]   ;;  %s1694_s12 = inlined_call_operand.vmem [shape: f32[1,32], index: 12, kind: input, shape index: {}]   ;;  %s1695_s13 = inlined_call_operand.hbm [shape: f32[2,8,32], index: 13, kind: output, shape index: {}]  }
   0x1   :  { %1696 = sst [smem:[#allocation5_spill]] %s1682_s0 }
   0x2   :  { %1697 = sst [smem:[#allocation6_spill]] %s1683_s1 }
   0x3   :  { %1698 = sst [smem:[#allocation7_spill]] %s1684_s2 }
   0x4   :  { %1699 = sst [smem:[#allocation8_spill]] %s1685_s3 }
   0x5   :  { %18 = vsyncpa [#allocation3], 0 }
   0x6   :  { %20 = vsyncpa [#allocation3 + $0x1], 0  ;;  %s1462_s25 = smov 0   ;;  %s1464_s26 = smov 0  }
   0x7   :  { %s1466_s27 = smov 0   ;;  %s1468_s28 = smov 0  }
   0x8 LB: > { %s1483_s29 = sadd.s32 4294967295, %s1381_s28   ;;  %s1131_s30 = sadd.s32 4294967294, %s1381_s28   ;;  %s1381_s28 = sphi %s1468_s28, %s1709_s28   ;;  %s1377_s27 = sphi %s1466_s27, %s1708_s27   ;;  %s1373_s26 = sphi %s1464_s26, %s1707_s26   ;;  %s1369_s25 = sphi %s1462_s25, %s1706_s25  }
   0x9   : > { %s1487_s14 = sadd.s32 1, %s1381_s28   ;;  %s311_s15 = sadd.s32 1, %s1377_s27 }
   0xa   : > { %s308_s16 = ssub.s32 %s1381_s28, %s1487_s14  ;;  %p321_p0 = scmp.ne.s32.totalorder %s1377_s27, %s1373_s26 }
   0xb   : > { %p309_p1 = scmp.eq.s32.totalorder %s308_s16, 0  ;;  %p322_p2 = scmp.eq.s32.totalorder %s1483_s29, 1 }
   0xc   : > { %p327_p3 = scmp.ne.s32.totalorder %s1373_s26, %s1369_s25  ;;  %p328_p4 = scmp.eq.s32.totalorder %s1131_s30, 1 }
   0xd   : > { %s1498_s17 = scalar_select %p309_p1, %s1377_s27, %s311_s15  }
   0xe   : > { %p1500_p5 = por %p322_p2, %p321_p0  ;;  %p1504_p6 = por %p328_p4, %p327_p3 }
   0xf   : > { %p1134_p7 = scmp.ge.s32.totalorder %s1381_s28, 1  ;;  %p389_p8 = scmp.lt.s32.totalorder %s1381_s28, 3 }
  0x11   : > { %p390_p9 = pnand %p1134_p7, %p389_p8 }
  0x12   : > { %p432_p10 = scmp.lt.s32.totalorder (!%p390_p9), %s1483_s29, 1  ;;  %s1702_s0 = sld [smem:[#allocation5_spill]] (!%p390_p9) }
  0x13   : > { %393 = sbr.rel (%p390_p9) target bundleno = 2025 (0x7e9), region = 72  ;;  %s1703_s3 = sld [smem:[#allocation8_spill]] (!%p390_p9) }
  0x14   : > { %s1704_s1 = sld [smem:[#allocation6_spill]] (!%p390_p9)  ;;  %s1384_s16 = smov (!%p390_p9), 104  }
  0x15   : > { %s1705_s2 = sld [smem:[#allocation7_spill]] (!%p390_p9)  ;;  %s1387_s22 = smov (!%p390_p9), 112  }
  0x16   : > { %s1388_s23 = smov (!%p390_p9), 64   ;;  %s1390_s30 = smov (!%p390_p9), 24  }
  0x17   : > { %s1391_s15 = smov (!%p390_p9), 16  }
  0x18   : > { %s433_s20 = scalar_select %p432_p10, %s1483_s29, 1  ;;  %vm440_vm0 = vcmask 261120   ;;  %v1383_v2 = vmov 32.0   ;;  %v1287_v32 = vld [vmem:[%s1686_s4] ss:$0 sm:$0xff]  ;;  %vm524_vm5 = vcmask 64512  }
  0x19   : > { %1293 = vrcp.f32 %v1383_v2  ;;  %v1214_v14 = vld [vmem:[%s1703_s3 + $0x8] sm:$0xff]  ;;  %v1213_v15 = vld [vmem:[%s1703_s3] sm:$0xff] }
  0x1a   : > { %s1136_s21 = sshll.u32 %s433_s20, 3  ;;  %508 = vmatpush.bf16.msra.mxu0 %v1214_v14  ;;  %v1285_v25 = vld [vmem:[%s1704_s1] ss:$0 sm:$0xff]  ;;  %s1385_s20 = smov 120  }
  0x1b   : > { %s435_s24 = scalar_lea.vmem %s1702_s0, %s1136_s21  ;;  %v1286_v28 = vld [vmem:[%s1705_s2] ss:$0 sm:$0xff]  ;;  %s1386_s21 = smov 96  }
  0x1c   : > { %v1515_v0 = vld [vmem:[%s435_s24] sm:$0xff]  ;;  %s1389_s24 = smov 8   ;;  %s429_s0 = sand.u32 1, %s1373_s26  }
  0x1d   : > { %v441_v1 = vsel %vm440_vm0, %v1515_v0, 0.0  ;;  %s1135_s1 = sshll.u32 %s429_s0, 3 }
  0x1e   : > { %442 = vadd.xlane.f32.xlu0 %v441_v1  ;;  %509 = vmatpush.bf16.msra.mxu0 %v1213_v15 }
  0x1f   : > { %v1294_v3 = vpop.eup %1293 }
  0x20   : > { %v445_v4 = vmul.f32 32.0, %v1294_v3  ;;  %vm449_vm1 = vweird.f32 %v1294_v3 }
  0x22   : > { %v446_v5 = vsub.f32 1.0, %v445_v4 }
  0x24   : > { %v447_v6 = vmul.f32 %v1294_v3, %v446_v5 }
  0x26   : > { %v448_v7 = vadd.f32 %v1294_v3, %v447_v6 }
  0x28   : > { %v1519_v8 = vsel %vm449_vm1, %v1294_v3, %v448_v7 }
  0x91   : > { %v443_v9 = vpop.xlane.xlu0 %442 }
  0x92   : > { %v451_v10 = vmul.f32 %v1519_v8, %v443_v9 }
  0x94   : > { %v452_v11 = vsub.f32 %v1515_v0, %v451_v10 }
  0x96   : > { %v453_v12 = vmul.f32 %v452_v11, %v452_v11 }
  0x98   : > { %v454_v13 = vsel %vm440_vm0, %v453_v12, 0.0 }
  0x99   : > { %455 = vadd.xlane.f32.xlu0 %v454_v13 }
 0x10c   : > { %v456_v16 = vpop.xlane.xlu0 %455 }
 0x10d   : > { %v457_v17 = vmul.f32 %v456_v16, %v1519_v8 }
 0x10f   : > { %v458_v18 = vadd.f32 1e-05, %v457_v17 }
 0x111   : > { %1295 = vrsqrt.f32 %v458_v18  ;;  %vm465_vm3 = vweird.f32 %v458_v18 }
 0x117   : > { %v1296_v19 = vpop.eup %1295 }
 0x118   : > { %v460_v20 = vmul.f32 %v1296_v19, %v458_v18  ;;  %vm466_vm2 = vweird.f32 %v1296_v19 }
 0x119   : > { %vm467_vm4 = vmor %vm465_vm3, %vm466_vm2 }
 0x11a   : > { %v461_v21 = vmul.f32 %v1296_v19, %v460_v20 }
 0x11c   : > { %v462_v22 = vmul.f32 0.5, %v461_v21 }
 0x11e   : > { %v463_v23 = vsub.f32 1.5, %v462_v22 }
 0x120   : > { %v464_v24 = vmul.f32 %v1296_v19, %v463_v23 }
 0x122   : > { %v468_v26 = vsel %vm467_vm4, %v1296_v19, %v464_v24 }
 0x123   : > { %v469_v27 = vmul.f32 %v468_v26, %v452_v11 }
 0x125   : > { %v473_v29 = vmul.f32 %v1285_v25, %v469_v27 }
 0x127   : > { %v477_v30 = vadd.f32 %v1286_v28, %v473_v29 }
 0x129   : > { %v478_v31 = vpack.c.bf16 %v477_v30, %v477_v30 }
 0x12b   : > { %1145 = vmatmul.msk.bf16.vlgmr.msra.gmra.mxu0 %vm440_vm0, %v478_v31 }
 0x1a8   : > { %v511_v33 = vpop.f32.mrf.mxu0 }
 0x1a9   : > { %v512_v34 = vadd.f32 %v1287_v32, %v511_v33 }
 0x1ab   : > { %520 = vrot.lane.b32.xlu2 %v512_v34, %s1384_s16  ;;  %516 = vrot.lane.b32.xlu1 %v512_v34, %s1385_s20 }
 0x1b0   : > { %v513_v35 = vpop.f32.mrf.mxu0 }
 0x1b3   : > { %522 = vrot.lane.b32.xlu2 %v512_v34, %s1386_s21  ;;  %518 = vrot.lane.b32.xlu1 %v512_v34, %s1387_s22 }
 0x205   : > { %v1541_v36 = vpop.permute.xlu2 %520 }
 0x206   : > { %601 = vrot.lane.b32.xlu2 %v1541_v36, %s1386_s21 }
 0x20d   : > { %v523_v37 = vpop.permute.xlu2 %522 }
 0x20e   : > { %1146 = vmatpush.xpose.msk.msra.mxu2 %vm524_vm5, %v523_v37 }
 0x211   : > { %1147 = vmatmul.msk.f32.vlgmr.msra.gmra.mxu2 %vm524_vm5, %v512_v34 }
 0x21d   : > { %v517_v38 = vpop.permute.xlu1 %516 }
 0x21e   : > { %549 = vrot.lane.b32.xlu0 %v517_v38, %s1386_s21  ;;  %v1275_v56 = vpack.i.bf16 %v512_v34, %v517_v38 }
 0x225   : > { %v1546_v39 = vpop.permute.xlu1 %518 }
 0x226   : > { %575 = vrot.lane.b32.xlu1 %v1546_v39, %s1386_s21  ;;  %v1280_v25 = vpack.i.bf16 %v1541_v36, %v1546_v39 }
 0x260   : > { %v602_v41 = vpop.permute.xlu2 %601 }
 0x290   : > { %v550_v40 = vpop.permute.xlu0 %549 }
 0x291   : > { %1148 = vmatpush.xpose.msk.msrb.mxu2 %vm524_vm5, %v550_v40 }
 0x294   : > { %v546_v42 = vpop.f32.mrf.mxu2  ;;  %1149 = vmatmul.msk.f32.vlgmr.msrb.gmra.mxu2 %vm524_vm5, %v517_v38 }
 0x295   : > { %1152 = vmatpush.xpose.msk.msra.mxu2 %vm524_vm5, %v602_v41  ;;  %v627_v43 = vsel %vm524_vm5, %v546_v42, -inf }
 0x296   : > { %628 = vmax.xlane.f32.xlu2 %v627_v43 }
 0x298   : > { %v576_v44 = vpop.permute.xlu1 %575 }
 0x299   : > { %1150 = vmatpush.xpose.msk.msra.mxu3 %vm524_vm5, %v576_v44 }
 0x29c   : > { %1151 = vmatmul.msk.f32.vlgmr.msra.gmra.mxu3 %vm524_vm5, %v1546_v39  ;;  %1153 = vmatmul.msk.f32.vlgmr.msra.gmra.mxu2 %vm524_vm5, %v1541_v36 }
 0x309   : > { %v629_v45 = vpop.xlane.xlu2 %628 }
 0x30a   : > { %v639_v46 = vsub.f32 %v546_v42, %v629_v45 }
 0x30c   : > { %v643_v49 = vmul.f32 1.442695, %v639_v46 }
 0x30e   : > { %1297 = vpow2.f32 %v643_v49 }
 0x314   : > { %v1298_v54 = vpop.eup %1297 }
 0x315   : > { %v651_v55 = vsel %vm524_vm5, %v1298_v54, 0.0 }
 0x317   : > { %v572_v47 = vpop.f32.mrf.mxu2 }
 0x318   : > { %v630_v48 = vsel %vm524_vm5, %v572_v47, -inf }
 0x319   : > { %631 = vmax.xlane.f32.xlu1 %v630_v48 }
 0x31f   : > { %v598_v50 = vpop.f32.mrf.mxu3  ;;  %v624_v51 = vpop.f32.mrf.mxu2 }
 0x320   : > { %v636_v52 = vsel %vm524_vm5, %v624_v51, -inf  ;;  %v633_v53 = vsel %vm524_vm5, %v598_v50, -inf }
 0x321   : > { %637 = vmax.xlane.f32.xlu2 %v636_v52  ;;  %634 = vmax.xlane.f32.xlu0 %v633_v53 }
 0x329   : > { %652 = vadd.xlane.f32.xlu2 %v651_v55 }
 0x341   : > { %1276 = vrot.lane.b32.xlu2 %v1275_v56, %s1388_s23 }
 0x38c   : > { %v632_v57 = vpop.xlane.xlu1 %631 }
 0x38d   : > { %v640_v58 = vsub.f32 %v572_v47, %v632_v57 }
 0x38f   : > { %v645_v59 = vmul.f32 1.442695, %v640_v58 }
 0x391   : > { %1299 = vpow2.f32 %v645_v59 }
 0x394   : > { %v638_v60 = vpop.xlane.xlu2 %637  ;;  %v635_v61 = vpop.xlane.xlu0 %634 }
 0x395   : > { %v642_v62 = vsub.f32 %v624_v51, %v638_v60  ;;  %v641_v63 = vsub.f32 %v598_v50, %v635_v61 }
 0x397   : > { %v1563_v1 = vpop.eup %1299  ;;  %v649_v2 = vmul.f32 1.442695, %v642_v62  ;;  %v647_v3 = vmul.f32 1.442695, %v641_v63 }
 0x398   : > { %v654_v4 = vsel %vm524_vm5, %v1563_v1, 0.0 }
 0x399   : > { %1301 = vpow2.f32 %v649_v2  ;;  %655 = vadd.xlane.f32.xlu1 %v654_v4 }
 0x39a   : > { %1303 = vpow2.f32 %v647_v3 }
 0x39c   : > { %v653_v5 = vpop.xlane.xlu2 %652 }
 0x39d   : > { %1305 = vrcp.f32 %v653_v5  ;;  %v674_v17 = vand.u32 2147483648, %v653_v5  ;;  %v672_v19 = vand.u32 2147483647, %v653_v5  ;;  %vm668_vm7 = vweird.f32 %v653_v5 }
 0x39f   : > { %v1567_v6 = vpop.eup %1301  ;;  %v675_v21 = vor.u32 1.1754944e-38, %v674_v17  ;;  %vm673_vm9 = vcmp.eq.f32.partialorder %v672_v19, 8.507059e+37 }
 0x3a0   : > { %v1569_v7 = vpop.eup %1303  ;;  %v660_v9 = vsel %vm524_vm5, %v1567_v6, 0.0 }
 0x3a1   : > { %661 = vadd.xlane.f32.xlu0 %v660_v9  ;;  %v657_v10 = vsel %vm524_vm5, %v1569_v7, 0.0 }
 0x3a2   : > { %658 = vadd.xlane.f32.xlu1 %v657_v10 }
 0x3a3   : > { %v1306_v11 = vpop.eup %1305 }
 0x3a4   : > { %v664_v12 = vmul.f32 %v1306_v11, %v653_v5  ;;  %v1277_v13 = vpop.permute.xlu2 %1276  ;;  %vm669_vm6 = vweird.f32 %v1306_v11 }
 0x3a5   : > { %v1279_v14 = vunpack.i.h.bf16 %v1277_v13  ;;  %v1278_v15 = vunpack.i.l.bf16 %v1277_v13  ;;  %vm670_vm8 = vmor %vm668_vm7, %vm669_vm6 }
 0x3a6   : > { %v665_v16 = vsub.f32 1.0, %v664_v12 }
 0x3a7   : > { %744 = vmatpush.msrb.mxu2 %v1279_v14  ;;  %770 = vmatpush.msrb.mxu3 %v1278_v15 }
 0x3a8   : > { %v666_v18 = vmul.f32 %v1306_v11, %v665_v16  ;;  %v1288_v16 = vld [vmem:[%s1688_s6] ss:$0 sm:$0xff] }
 0x3aa   : > { %v667_v20 = vadd.f32 %v1306_v11, %v666_v18 }
 0x3ac   : > { %v671_v22 = vsel %vm670_vm8, %v1306_v11, %v667_v20  ;;  %vm840_vm8 = vcmask 130048  }
 0x3ad   : > { %v676_v23 = vsel %vm673_vm9, %v675_v21, %v671_v22  ;;  %vm842_vm9 = vcmask 195584  }
 0x3ae   : > { %v677_v24 = vmul.f32 %v1298_v54, %v676_v23 }
 0x3b0   : > { %1154 = vmatmul.msk.f32.vlgmr.msrb.gmra.mxu2 %vm524_vm5, %v677_v24 }
 0x3bb   : > { %1281 = vrot.lane.b32.xlu1 %v1280_v25, %s1388_s23  ;;  %s431_s23 = scalar_lea.vmem [#allocation2], %s1135_s1  ;;  %s1339_s1 = scalar_lea.hbm %s1695_s13, 16 }
 0x40c   : > { %v656_v26 = vpop.xlane.xlu1 %655 }
 0x40d   : > { %1307 = vrcp.f32 %v656_v26  ;;  %v689_v32 = vand.u32 2147483648, %v656_v26  ;;  %v687_v34 = vand.u32 2147483647, %v656_v26  ;;  %vm683_vm11 = vweird.f32 %v656_v26 }
 0x40f   : > { %v690_v36 = vor.u32 1.1754944e-38, %v689_v32  ;;  %vm688_vm13 = vcmp.eq.f32.partialorder %v687_v34, 8.507059e+37 }
 0x413   : > { %v1308_v27 = vpop.eup %1307 }
 0x414   : > { %v679_v28 = vmul.f32 %v1308_v27, %v656_v26  ;;  %v662_v29 = vpop.xlane.xlu0 %661  ;;  %vm684_vm10 = vweird.f32 %v1308_v27 }
 0x415   : > { %1309 = vrcp.f32 %v662_v29  ;;  %v659_v30 = vpop.xlane.xlu1 %658  ;;  %vm685_vm12 = vmor %vm683_vm11, %vm684_vm10  ;;  %vm713_vm1 = vweird.f32 %v662_v29  ;;  %v719_v50 = vand.u32 2147483648, %v662_v29  ;;  %v717_v52 = vand.u32 2147483647, %v662_v29 }
 0x416   : > { %v680_v31 = vsub.f32 1.0, %v679_v28  ;;  %1311 = vrcp.f32 %v659_v30  ;;  %v704_v51 = vand.u32 2147483648, %v659_v30  ;;  %vm698_vm3 = vweird.f32 %v659_v30 }
 0x417   : > { %v702_v53 = vand.u32 2147483647, %v659_v30  ;;  %v720_v56 = vor.u32 1.1754944e-38, %v719_v50  ;;  %vm718_vm6 = vcmp.eq.f32.partialorder %v717_v52, 8.507059e+37  ;;  %v1291_v50 = vld [vmem:[%s1692_s10] ss:$0 sm:$0xff] }
 0x418   : > { %v681_v33 = vmul.f32 %v1308_v27, %v680_v31  ;;  %v705_v57 = vor.u32 1.1754944e-38, %v704_v51  ;;  %v1219_v51 = vld [vmem:[%s1693_s11] sm:$0xff] }
 0x419   : > { %vm703_vm7 = vcmp.eq.f32.partialorder %v702_v53, 8.507059e+37 }
 0x41a   : > { %v682_v35 = vadd.f32 %v1308_v27, %v681_v33 }
 0x41b   : > { %v1310_v37 = vpop.eup %1309 }
 0x41c   : > { %v1312_v38 = vpop.eup %1311  ;;  %v709_v39 = vmul.f32 %v1310_v37, %v662_v29  ;;  %v686_v40 = vsel %vm685_vm12, %v1308_v27, %v682_v35  ;;  %vm714_vm14 = vweird.f32 %v1310_v37  ;;  %v1218_v27 = vld [vmem:[%s1691_s9 + $0x8] sm:$0xff] }
 0x41d   : > { %v694_v41 = vmul.f32 %v1312_v38, %v659_v30  ;;  %v691_v42 = vsel %vm688_vm13, %v690_v36, %v686_v40  ;;  %vm699_vm15 = vweird.f32 %v1312_v38  ;;  %vm715_vm2 = vmor %vm713_vm1, %vm714_vm14  ;;  %944 = vmatpush.bf16.msrb.mxu0 %v1218_v27  ;;  %v1289_v36 = vld [vmem:[%s1689_s7] ss:$0 sm:$0xff] }
 0x41e   : > { %v710_v43 = vsub.f32 1.0, %v709_v39  ;;  %v692_v44 = vmul.f32 %v1563_v1, %v691_v42  ;;  %vm700_vm4 = vmor %vm698_vm3, %vm699_vm15 }
 0x41f   : > { %v695_v45 = vsub.f32 1.0, %v694_v41 }
 0x420   : > { %1155 = vmatmul.msk.f32.vlgmr.msrb.gmra.mxu3 %vm524_vm5, %v692_v44  ;;  %v711_v46 = vmul.f32 %v1310_v37, %v710_v43  ;;  %v1226_v43 = vld [vmem:[%s1693_s11 + $0x38] sm:$0xff]  ;;  %v1225_v44 = vld [vmem:[%s1693_s11 + $0x30] sm:$0xff] }
 0x421   : > { %v696_v47 = vmul.f32 %v1312_v38, %v695_v45  ;;  %1041 = vmatpush.bf16.msra.mxu1 %v1226_v43  ;;  %v1224_v45 = vld [vmem:[%s1693_s11 + $0x28] sm:$0xff] }
 0x422   : > { %v712_v48 = vadd.f32 %v1310_v37, %v711_v46  ;;  %v1223_v46 = vld [vmem:[%s1693_s11 + $0x20] sm:$0xff] }
 0x423   : > { %v697_v49 = vadd.f32 %v1312_v38, %v696_v47  ;;  %v1222_v47 = vld [vmem:[%s1693_s11 + $0x18] sm:$0xff] }
 0x424   : > { %v716_v54 = vsel %vm715_vm2, %v1310_v37, %v712_v48  ;;  %v1221_v48 = vld [vmem:[%s1693_s11 + $0x10] sm:$0xff] }
 0x425   : > { %v701_v55 = vsel %vm700_vm4, %v1312_v38, %v697_v49  ;;  %v721_v58 = vsel %vm718_vm6, %v720_v56, %v716_v54  ;;  %1042 = vmatpush.bf16.msra.mxu1 %v1225_v44  ;;  %v1220_v49 = vld [vmem:[%s1693_s11 + $0x8] sm:$0xff] }
 0x426   : > { %v706_v59 = vsel %vm703_vm7, %v705_v57, %v701_v55  ;;  %v722_v1 = vmul.f32 %v1567_v6, %v721_v58  ;;  %v1216_v6 = vld [vmem:[%s1687_s5 + $0x8] sm:$0xff] }
 0x427   : > { %v707_v63 = vmul.f32 %v1569_v7, %v706_v59  ;;  %v1215_v7 = vld [vmem:[%s1687_s5] sm:$0xff] }
 0x429   : > { %1043 = vmatpush.bf16.msra.mxu1 %v1224_v45 }
 0x42d   : > { %v1282_v60 = vpop.permute.xlu1 %1281  ;;  %1044 = vmatpush.bf16.msra.mxu1 %v1223_v46 }
 0x42e   : > { %v1284_v61 = vunpack.i.h.bf16 %v1282_v60  ;;  %v1283_v62 = vunpack.i.l.bf16 %v1282_v60 }
 0x430   : > { %796 = vmatpush.msra.mxu3 %v1283_v62  ;;  %822 = vmatpush.msra.mxu2 %v1284_v61 }
 0x431   : > { %1156 = vmatmul.msk.f32.vlgmr.msra.gmra.mxu3 %vm524_vm5, %v707_v63  ;;  %1157 = vmatmul.msk.f32.vlgmr.msra.gmra.mxu2 %vm524_vm5, %v722_v1 }
 0x432   : > { %874 = vmatpush.bf16.msrb.mxu3 %v1216_v6  ;;  %1045 = vmatpush.bf16.msra.mxu1 %v1222_v47 }
 0x433   : > { %v746_v3 = vpop.f32.mrf.mxu2 }
 0x436   : > { %875 = vmatpush.bf16.msrb.mxu3 %v1215_v7  ;;  %1046 = vmatpush.bf16.msra.mxu1 %v1221_v48 }
 0x43a   : > { %1047 = vmatpush.bf16.msra.mxu1 %v1220_v49 }
 0x43e   : > { %1048 = vmatpush.bf16.msra.mxu1 %v1219_v51 }
 0x4a3   : > { %v772_v2 = vpop.f32.mrf.mxu3 }
 0x4a4   : > { %828 = vrot.lane.b32.xlu0 %v772_v2, %s1389_s24  ;;  %s1069_s24 = sshll.u32 %s431_s23, 4  ;;  %s1070_s24 = int_to_ptr.vmem [resolvable:$true] %s1069_s24 }
 0x4b4   : > { %v798_v4 = vpop.f32.mrf.mxu3  ;;  %v824_v5 = vpop.f32.mrf.mxu2 }
 0x4b5   : > { %836 = vrot.lane.b32.xlu0 %v824_v5, %s1390_s30  ;;  %832 = vrot.lane.b32.xlu2 %v798_v4, %s1391_s15  ;;  %s1210_s30 = sshll.u32 %s1483_s29, 3  ;;  %s1057_s29 = scalar_lea.sflag [#allocation3], %s429_s0 }
 0x4b6   : > { %s1067_s22 = scalar_lea.hbm %s1695_s13, %s1210_s30 }
 0x4b7   : > { %s1071_s2 = sshll.u32 %s1067_s22, 4  ;;  %s1072_s2 = int_to_ptr.hbm [resolvable:$true] %s1071_s2 }
 0x4b8   : > { %s1333_s3 = sshra.s32 %s1072_s2, 4  ;;  %s1334_s3 = int_to_ptr.hbm [resolvable:$true] %s1333_s3 }
 0x4b9   : > { %s1335_s15 = scalar_lea.hbm %s1334_s3, 8  ;;  %p1340_p0 = scmp.lt.s32.totalorder %s1334_s3, %s1695_s13 }
 0x4ba   : > { %p1336_p11 = scmp.ne.s32.totalorder %s1334_s3, %s1335_s15  ;;  %p1341_p1 = scmp.lt.s32.totalorder %s1339_s1, %s1335_s15 }
 0x4bc   : > { %p1337_p12 = pnand %p1336_p11, %p1500_p5  ;;  %p1342_p2 = por %p1341_p1, %p1340_p0 }
 0x4be   : > { %p1338_p13 = pneg %p1337_p12 }
 0x4c0   : > { %p1343_p3 = pnand %p1342_p2, %p1338_p13 }
 0x50f   : > { %v833_v11 = vpop.permute.xlu2 %832 }
 0x516   : > { %v829_v9 = vpop.permute.xlu0 %828 }
 0x517   : > { %v839_v10 = vsel %vm524_vm5, %v746_v3, %v829_v9  ;;  %v1292_v9 = vld [vmem:[%s1694_s12] ss:$0 sm:$0xff] }
 0x518   : > { %v841_v13 = vsel %vm840_vm8, %v839_v10, %v833_v11 }
 0x527   : > { %v837_v12 = vpop.permute.xlu0 %836 }
 0x528   : > { %v843_v14 = vsel %vm842_vm9, %v841_v13, %v837_v12 }
 0x529   : > { %v844_v15 = vpack.c.bf16 %v843_v14, %v843_v14 }
 0x52b   : > { %1166 = vmatmul.msk.bf16.vlgmr.msrb.gmra.mxu3 %vm440_vm0, %v844_v15 }
 0x5ae   : > { %v877_v17 = vpop.f32.mrf.mxu3 }
 0x5af   : > { %v878_v18 = vadd.f32 %v1288_v16, %v877_v17 }
 0x5b1   : > { %v1597_v19 = vadd.f32 %v878_v18, %v1515_v0  ;;  %v1217_v0 = vld [vmem:[%s1691_s9] sm:$0xff] }
 0x5b2   : > { %945 = vmatpush.bf16.msrb.mxu0 %v1217_v0 }
 0x5b3   : > { %v884_v20 = vsel %vm440_vm0, %v1597_v19, 0.0 }
 0x5b4   : > { %885 = vadd.xlane.f32.xlu1 %v884_v20 }
 0x5b6   : > { %v879_v21 = vpop.f32.mrf.mxu3 }
 0x627   : > { %v886_v22 = vpop.xlane.xlu1 %885 }
 0x628   : > { %v887_v23 = vmul.f32 %v886_v22, %v1519_v8 }
 0x62a   : > { %v888_v24 = vsub.f32 %v1597_v19, %v887_v23 }
 0x62c   : > { %v889_v25 = vmul.f32 %v888_v24, %v888_v24 }
 0x62e   : > { %v890_v26 = vsel %vm440_vm0, %v889_v25, 0.0 }
 0x62f   : > { %891 = vadd.xlane.f32.xlu2 %v890_v26 }
 0x6a2   : > { %v892_v28 = vpop.xlane.xlu2 %891 }
 0x6a3   : > { %v893_v29 = vmul.f32 %v892_v28, %v1519_v8  ;;  %v1290_v8 = vld [vmem:[%s1690_s8] ss:$0 sm:$0xff] }
 0x6a5   : > { %v894_v30 = vadd.f32 1e-05, %v893_v29 }
 0x6a7   : > { %1313 = vrsqrt.f32 %v894_v30  ;;  %vm901_vm10 = vweird.f32 %v894_v30 }
 0x6ad   : > { %v1314_v31 = vpop.eup %1313 }
 0x6ae   : > { %v896_v32 = vmul.f32 %v1314_v31, %v894_v30  ;;  %vm902_vm5 = vweird.f32 %v1314_v31 }
 0x6af   : > { %vm903_vm11 = vmor %vm901_vm10, %vm902_vm5 }
 0x6b0   : > { %v897_v33 = vmul.f32 %v1314_v31, %v896_v32 }
 0x6b2   : > { %v898_v34 = vmul.f32 0.5, %v897_v33 }
 0x6b4   : > { %v899_v35 = vsub.f32 1.5, %v898_v34 }
 0x6b6   : > { %v900_v37 = vmul.f32 %v1314_v31, %v899_v35 }
 0x6b8   : > { %v904_v38 = vsel %vm903_vm11, %v1314_v31, %v900_v37 }
 0x6b9   : > { %v905_v39 = vmul.f32 %v904_v38, %v888_v24 }
 0x6bb   : > { %v909_v40 = vmul.f32 %v1289_v36, %v905_v39 }
 0x6bd   : > { %v913_v41 = vadd.f32 %v1290_v8, %v909_v40 }
 0x6bf   : > { %v914_v42 = vpack.c.bf16 %v913_v41, %v913_v41 }
 0x6c1   : > { %1175 = vmatmul.msk.bf16.vlgmr.msrb.gmra.mxu0 %vm440_vm0, %v914_v42 }
 0x73e   : > { %v947_v52 = vpop.f32.mrf.mxu0 }
 0x73f   : > { %v948_v53 = vadd.f32 %v1291_v50, %v947_v52 }
 0x741   : > { %v1176_v54 = vmul.f32 -1.702, %v948_v53 }
 0x743   : > { %v953_v55 = vmul.f32 1.442695, %v1176_v54 }
 0x745   : > { %1315 = vpow2.f32 %v953_v55 }
 0x746   : > { %v949_v56 = vpop.f32.mrf.mxu0 }
 0x74b   : > { %v1316_v57 = vpop.eup %1315 }
 0x74c   : > { %v955_v58 = vadd.f32 1.0, %v1316_v57 }
 0x74e   : > { %1317 = vrcp.f32 %v955_v58  ;;  %v967_v62 = vand.u32 2147483648, %v955_v58  ;;  %v965_v1 = vand.u32 2147483647, %v955_v58  ;;  %vm961_vm13 = vweird.f32 %v955_v58 }
 0x750   : > { %v968_v3 = vor.u32 1.1754944e-38, %v967_v62  ;;  %vm966_vm15 = vcmp.eq.f32.partialorder %v965_v1, 8.507059e+37 }
 0x754   : > { %v1318_v59 = vpop.eup %1317 }
 0x755   : > { %v957_v60 = vmul.f32 %v1318_v59, %v955_v58  ;;  %vm962_vm12 = vweird.f32 %v1318_v59 }
 0x756   : > { %vm963_vm14 = vmor %vm961_vm13, %vm962_vm12 }
 0x757   : > { %v958_v61 = vsub.f32 1.0, %v957_v60 }
 0x759   : > { %v959_v63 = vmul.f32 %v1318_v59, %v958_v61 }
 0x75b   : > { %v960_v2 = vadd.f32 %v1318_v59, %v959_v63 }
 0x75d   : > { %v964_v4 = vsel %vm963_vm14, %v1318_v59, %v960_v2 }
 0x75e   : > { %v969_v5 = vsel %vm966_vm15, %v968_v3, %v964_v4 }
 0x75f   : > { %v971_v6 = vmul.f32 %v969_v5, %v948_v53 }
 0x761   : > { %v972_v7 = vpack.c.bf16 %v971_v6, %v971_v6 }
 0x763   : > { %1049 = vmatmul.bf16.vlgmr.msra.gmra.mxu1 %v972_v7 }
 0x7e0   : > { %v1050_v10 = vpop.f32.mrf.mxu1 }
 0x7e1   : > { %v1051_v11 = vadd.f32 %v1292_v9, %v1050_v10 }
 0x7e3   : > { %v1054_v12 = vadd.f32 %v1051_v11, %v1597_v19 }
 0x7e5   : > { %1055 = vst.msk [vmem:[%s431_s23] sm:$0xff] %vm440_vm0, %v1054_v12 }
 0x7e6   : > { %1346 = shalt.err (!%p1343_p3)
}
 0x7e7   : > { %1227 = dma.vmem_to_hbm [thread:$0]  (%p1500_p5), %s1070_s24, 128, %s1072_s2, %s1057_s29  }
 0x7e8   : > { %v1052_v13 = vpop.f32.mrf.mxu1 }
 0x7e9 PF: > { %p1233_p4 = scmp.ge.s32.totalorder %s1381_s28, 2  ;;  %s1083_s0 = sand.u32 1, %s1369_s25  }
 0x7ea   : > { %s1084_s22 = scalar_lea.sflag [#allocation3], %s1083_s0 }
 0x7eb   : > { %p1230_p7 = pnand %p1233_p4, %p1504_p6 }
 0x7ed   : > { %p1231_p8 = pneg %p1230_p7 }
 0x7ef   : > { %1364 = dma.done.wait (%p1231_p8), %s1084_s22, 128  }
 0x7f0   : > { %1366 = vsyncadd (%p1231_p8), %s1084_s22, 4294967168  ;;  %p23_p9 = scmp.ge.s32.totalorder %s1487_s14, 4   ;;  %s1706_s25 = smov %s1373_s26 }
 0x7f1   : > { %s1707_s26 = smov %s1377_s27  ;;  %s1708_s27 = smov %s1498_s17 }
 0x7f2   : > { %s1709_s28 = smov %s1487_s14  ;;  %25 = sbr.rel (!%p23_p9) target bundleno = 8 (0x8), region = 107 }
 0x7f7   :  { %1090 = vsyncpa [#allocation3], 1 }
 0x7f8   :  { %1092 = vsyncpa [#allocation3 + $0x1], 1 }

</bundles_post_ra>
